<compile_context>
chip_gen: v6e
topology: v6e:2x2x1
jax: 0.10.0
libtpu: 0.0.40
codegen_flags: <defaults>
</compile_context>

<pallas_src>
import functools

import jax
import jax.numpy as jnp
from jax.experimental import pallas as pl
from jax.experimental.pallas import tpu as pltpu


def _sdpa_dropout_kernel(q_ref, k_ref, v_ref, u_ref, o_ref, *,
                         inv_scale_factor: float, dropout_p: float):
    # Scale q once (cheaper than dividing the (B, Lq, Lk) score tile), then
    # feed bf16 operands to the MXU with f32 accumulation.
    scale = 1.0 / float(inv_scale_factor)
    q = (q_ref[...].astype(jnp.float32) * scale).astype(jnp.bfloat16)   # (B, Lq, D)
    k = k_ref[...].astype(jnp.bfloat16)                                 # (B, Lk, D)
    v = v_ref[...].astype(jnp.bfloat16)                                 # (B, Lk, Dv)

    # Batched scores (B, Lq, Lk), accumulated in f32 on the MXU.
    s = jnp.einsum("bqd,bkd->bqk", q, k, preferred_element_type=jnp.float32)

    # Numerically-stable softmax over the last axis (f32).
    m = jnp.max(s, axis=-1, keepdims=True)
    e = jnp.exp(s - m)
    denom = jnp.sum(e, axis=-1, keepdims=True)
    p = e * pl.reciprocal(denom, approx=True)

    # Inverted dropout (training semantics): drop with prob p, rescale by 1/(1-p).
    if dropout_p > 0.0:
        keep = u_ref[...] >= jnp.float32(dropout_p)
        p = jnp.where(keep, p * (1.0 / (1.0 - dropout_p)), 0.0)

    # (B, Lq, Lk) @ (B, Lk, Dv) -> (B, Lq, Dv), f32 accumulation.
    o = jnp.einsum("bqk,bkd->bqd", p.astype(jnp.bfloat16), v,
                   preferred_element_type=jnp.float32)
    o_ref[...] = o.astype(o_ref.dtype)


def sdpa_dropout(query, key, value, *, dropout_p=0.5, inv_scale_factor=2.0,
                 rng_key=None):
    B, Lq, D = query.shape
    Bk, Lk, Dk = key.shape
    Bv, Lkv, Dv = value.shape
    assert B == Bk == Bv and D == Dk and Lk == Lkv

    dropout_p = float(dropout_p)
    if dropout_p > 0.0:
        if rng_key is None:
            rng_key = jax.random.PRNGKey(0)
        # TODO(synk): RNG stream differs from torch's dropout (expected); the
        # inverted-dropout semantics are identical.
        u = jax.random.uniform(rng_key, (B, Lq, Lk), dtype=jnp.float32)
    else:
        u = jnp.zeros((B, Lq, Lk), dtype=jnp.float32)

    kernel = functools.partial(
        _sdpa_dropout_kernel,
        inv_scale_factor=float(inv_scale_factor),
        dropout_p=dropout_p,
    )

    # One grid step over the whole batch; every block is the full array, so the
    # (8, 128) block-divisibility rule is satisfied trivially.
    return pl.pallas_call(
        kernel,
        out_shape=jax.ShapeDtypeStruct((B, Lq, Dv), query.dtype),
        grid=(1,),
        in_specs=[
            pl.BlockSpec((B, Lq, D), lambda i: (0, 0, 0)),
            pl.BlockSpec((B, Lk, D), lambda i: (0, 0, 0)),
            pl.BlockSpec((B, Lk, Dv), lambda i: (0, 0, 0)),
            pl.BlockSpec((B, Lq, Lk), lambda i: (0, 0, 0)),
        ],
        out_specs=pl.BlockSpec((B, Lq, Dv), lambda i: (0, 0, 0)),
        compiler_params=pltpu.CompilerParams(
            dimension_semantics=("arbitrary",),
        ),
    )(query, key, value, u)


if __name__ == "__main__":
    # Small shapes consistent with the module's forward:
    #   query (B, L, D), key (B, S, D), value (B, S, Dv)
    B, L, S, D, Dv = 2, 8, 16, 32, 32
    k0, k1, k2, k3 = jax.random.split(jax.random.PRNGKey(0), 4)
    query = jax.random.normal(k0, (B, L, D), dtype=jnp.float32)
    key = jax.random.normal(k1, (B, S, D), dtype=jnp.float32)
    value = jax.random.normal(k2, (B, S, Dv), dtype=jnp.float32)

    out = sdpa_dropout(query, key, value, dropout_p=0.5, inv_scale_factor=2.0,
                       rng_key=k3)
    jax.block_until_ready(out)
    assert out.shape == (B, L, Dv)
    assert bool(jnp.all(jnp.isfinite(out)))

    # Sanity check of the math path with dropout disabled.
    out_nodrop = sdpa_dropout(query, key, value, dropout_p=0.0,
                              inv_scale_factor=2.0)
    jax.block_until_ready(out_nodrop)

    # (a) bf16-mirrored reference (same MXU operand dtype path as the kernel).
    q_b = (query * 0.5).astype(jnp.bfloat16)
    k_b = key.astype(jnp.bfloat16)
    v_b = value.astype(jnp.bfloat16)
    s_b = jnp.einsum("bqd,bkd->bqk", q_b, k_b, preferred_element_type=jnp.float32)
    p_b = jax.nn.softmax(s_b, axis=-1)
    ref_b = jnp.einsum("bqk,bkd->bqd", p_b.astype(jnp.bfloat16), v_b,
                       preferred_element_type=jnp.float32)
    assert jnp.allclose(out_nodrop, ref_b, atol=2e-2, rtol=2e-2)

    # (b) full-f32 reference (original module semantics; loose tolerance since
    # the kernel uses bf16 MXU operands).
    ref = jnp.einsum(
        "bls,bsd->bld",
        jax.nn.softmax(jnp.einsum("bld,bsd->bls", query, key) / 2.0, axis=-1),
        value,
    )
    assert jnp.allclose(out_nodrop, ref, atol=1e-1, rtol=1e-1)

    print("KERNEL_OK")
</pallas_src>

<mosaic_0001>
module attributes {stable_mosaic.version = 11 : i64} {
  func.func @_sdpa_dropout_kernel(%arg0: i32, %arg1: memref<2x8x32xf32, #tpu.memory_space<vmem>>, %arg2: memref<2x16x32xf32, #tpu.memory_space<vmem>>, %arg3: memref<2x16x32xf32, #tpu.memory_space<vmem>>, %arg4: memref<2x8x16xf32, #tpu.memory_space<vmem>>, %arg5: memref<2x8x32xf32, #tpu.memory_space<vmem>>) attributes {dimension_semantics = [#tpu.dimension_semantics<arbitrary>], iteration_bounds = array<i64: 1>, scalar_prefetch = 0 : i64, scratch_operands = 0 : i64, tpu.core_type = #tpu.core_type<tc>, window_params = [{pipeline_mode = #tpu.pipeline_mode<synchronous>, transform_indices = @transform_0, window_bounds = array<i64: 2, 8, 32>}, {pipeline_mode = #tpu.pipeline_mode<synchronous>, transform_indices = @transform_1, window_bounds = array<i64: 2, 16, 32>}, {pipeline_mode = #tpu.pipeline_mode<synchronous>, transform_indices = @transform_2, window_bounds = array<i64: 2, 16, 32>}, {pipeline_mode = #tpu.pipeline_mode<synchronous>, transform_indices = @transform_3, window_bounds = array<i64: 2, 8, 16>}, {pipeline_mode = #tpu.pipeline_mode<synchronous>, transform_indices = @transform_4, window_bounds = array<i64: 2, 8, 32>}]} {
    %c0 = arith.constant 0 : index
    %c0_0 = arith.constant 0 : index
    %c0_1 = arith.constant 0 : index
    %0 = vector.load %arg1[%c0, %c0_0, %c0_1] : memref<2x8x32xf32, #tpu.memory_space<vmem>>, vector<2x8x32xf32>
    %cst = arith.constant 5.000000e-01 : f32
    %1 = vector.broadcast %cst : f32 to vector<2x8x32xf32>
    %2 = arith.mulf %0, %1 : vector<2x8x32xf32>
    %3 = arith.truncf %2 : vector<2x8x32xf32> to vector<2x8x32xbf16>
    %c0_2 = arith.constant 0 : index
    %c0_3 = arith.constant 0 : index
    %c0_4 = arith.constant 0 : index
    %4 = vector.load %arg2[%c0_2, %c0_3, %c0_4] : memref<2x16x32xf32, #tpu.memory_space<vmem>>, vector<2x16x32xf32>
    %5 = arith.truncf %4 : vector<2x16x32xf32> to vector<2x16x32xbf16>
    %c0_5 = arith.constant 0 : index
    %c0_6 = arith.constant 0 : index
    %c0_7 = arith.constant 0 : index
    %6 = vector.load %arg3[%c0_5, %c0_6, %c0_7] : memref<2x16x32xf32, #tpu.memory_space<vmem>>, vector<2x16x32xf32>
    %7 = arith.truncf %6 : vector<2x16x32xf32> to vector<2x16x32xbf16>
    "tpu.trace_start"() <{level = 10 : i32, message = "bqd,bkd->bqk"}> : () -> ()
    %cst_8 = arith.constant dense<0.000000e+00> : vector<2x8x16xf32>
    %8 = tpu.matmul %3, %5, %cst_8 {dimension_numbers = #tpu.dot_dimension_numbers<[2], [2], [1], [1], [0, 0, 0, 1, 1, 1], [0], [0]>} : vector<2x8x32xbf16>, vector<2x16x32xbf16>, vector<2x8x16xf32> -> vector<2x8x16xf32>
    "tpu.trace_stop"() : () -> ()
    %cst_9 = arith.constant dense<0xFF800000> : vector<2x8xf32>
    %9 = vector.multi_reduction <maximumf>, %8, %cst_9 [2] : vector<2x8x16xf32> to vector<2x8xf32>
    %10 = vector.shape_cast %9 : vector<2x8xf32> to vector<2x8x1xf32>
    %11 = vector.broadcast %10 : vector<2x8x1xf32> to vector<2x8x16xf32>
    %12 = arith.subf %8, %11 : vector<2x8x16xf32>
    %13 = math.exp %12 : vector<2x8x16xf32>
    %cst_10 = arith.constant dense<0.000000e+00> : vector<2x8xf32>
    %14 = vector.multi_reduction <add>, %13, %cst_10 [2] : vector<2x8x16xf32> to vector<2x8xf32>
    %15 = vector.shape_cast %14 : vector<2x8xf32> to vector<2x8x1xf32>
    %16 = tpu.reciprocal %15 {approx = true} : vector<2x8x1xf32> -> vector<2x8x1xf32>
    %17 = vector.broadcast %16 : vector<2x8x1xf32> to vector<2x8x16xf32>
    %18 = arith.mulf %13, %17 : vector<2x8x16xf32>
    %c0_11 = arith.constant 0 : index
    %c0_12 = arith.constant 0 : index
    %c0_13 = arith.constant 0 : index
    %19 = vector.load %arg4[%c0_11, %c0_12, %c0_13] : memref<2x8x16xf32, #tpu.memory_space<vmem>>, vector<2x8x16xf32>
    %cst_14 = arith.constant 5.000000e-01 : f32
    %20 = vector.broadcast %cst_14 : f32 to vector<2x8x16xf32>
    %21 = arith.cmpf oge, %19, %20 : vector<2x8x16xf32>
    %cst_15 = arith.constant 2.000000e+00 : f32
    %22 = vector.broadcast %cst_15 : f32 to vector<2x8x16xf32>
    %23 = arith.mulf %18, %22 : vector<2x8x16xf32>
    %cst_16 = arith.constant 0.000000e+00 : f32
    %24 = vector.broadcast %cst_16 : f32 to vector<2x8x16xf32>
    %25 = arith.select %21, %23, %24 : vector<2x8x16xi1>, vector<2x8x16xf32>
    %26 = arith.truncf %25 : vector<2x8x16xf32> to vector<2x8x16xbf16>
    "tpu.trace_start"() <{level = 10 : i32, message = "bqk,bkd->bqd"}> : () -> ()
    %cst_17 = arith.constant dense<0.000000e+00> : vector<2x8x32xf32>
    %27 = tpu.matmul %26, %7, %cst_17 {dimension_numbers = #tpu.dot_dimension_numbers<[2], [1], [1], [2], [0, 0, 0, 1, 1, 2], [0], [0]>} : vector<2x8x16xbf16>, vector<2x16x32xbf16>, vector<2x8x32xf32> -> vector<2x8x32xf32>
    "tpu.trace_stop"() : () -> ()
    %c0_18 = arith.constant 0 : index
    %c0_19 = arith.constant 0 : index
    %c0_20 = arith.constant 0 : index
    %28 = vector.load %arg5[%c0_18, %c0_19, %c0_20] : memref<2x8x32xf32, #tpu.memory_space<vmem>>, vector<2x8x32xf32>
    tpu.vector_store %arg5[%c0_18, %c0_19, %c0_20], %27 {strides = array<i32>} : memref<2x8x32xf32, #tpu.memory_space<vmem>>, vector<2x8x32xf32>,
    return
  }
  func.func @transform_0(%arg0: i32) -> (i32, i32, i32) {
    %c0_i32 = arith.constant 0 : i32
    %c0_i32_0 = arith.constant 0 : i32
    %c0_i32_1 = arith.constant 0 : i32
    %c0_i32_2 = arith.constant 0 : i32
    return %c0_i32, %c0_i32_0, %c0_i32_1 : i32, i32, i32
  }
  func.func @transform_1(%arg0: i32) -> (i32, i32, i32) {
    %c0_i32 = arith.constant 0 : i32
    %c0_i32_0 = arith.constant 0 : i32
    %c0_i32_1 = arith.constant 0 : i32
    %c0_i32_2 = arith.constant 0 : i32
    return %c0_i32, %c0_i32_0, %c0_i32_1 : i32, i32, i32
  }
  func.func @transform_2(%arg0: i32) -> (i32, i32, i32) {
    %c0_i32 = arith.constant 0 : i32
    %c0_i32_0 = arith.constant 0 : i32
    %c0_i32_1 = arith.constant 0 : i32
    %c0_i32_2 = arith.constant 0 : i32
    return %c0_i32, %c0_i32_0, %c0_i32_1 : i32, i32, i32
  }
  func.func @transform_3(%arg0: i32) -> (i32, i32, i32) {
    %c0_i32 = arith.constant 0 : i32
    %c0_i32_0 = arith.constant 0 : i32
    %c0_i32_1 = arith.constant 0 : i32
    %c0_i32_2 = arith.constant 0 : i32
    return %c0_i32, %c0_i32_0, %c0_i32_1 : i32, i32, i32
  }
  func.func @transform_4(%arg0: i32) -> (i32, i32, i32) {
    %c0_i32 = arith.constant 0 : i32
    %c0_i32_0 = arith.constant 0 : i32
    %c0_i32_1 = arith.constant 0 : i32
    %c0_i32_2 = arith.constant 0 : i32
    return %c0_i32, %c0_i32_0, %c0_i32_1 : i32, i32, i32
  }
}

</mosaic_0001>

<bundles_post_ra>
// kernel: tpu_custom_call.1
= control target key start
LH: loop header
LB: loop body
LE: loop exit
PB: predicated region body
PF: predicated region fallthrough
CT: control target
= control target key end

     0   :  { %9 = vsyncpa [#allocation3], 0  ;;  %s566_s0 = inlined_call_operand.hbm [shape: f32[2,8,32], index: 0, kind: input, shape index: {}]   ;;  %s567_s1 = inlined_call_operand.hbm [shape: f32[2,16,32], index: 1, kind: input, shape index: {}]   ;;  %s568_s2 = inlined_call_operand.hbm [shape: f32[2,16,32], index: 2, kind: input, shape index: {}]   ;;  %s569_s3 = inlined_call_operand.hbm [shape: f32[2,8,16], index: 3, kind: input, shape index: {}]   ;;  %s570_s4 = inlined_call_operand.hbm [shape: f32[2,8,32], index: 4, kind: output, shape index: {}]  }
   0x1   :  { %10 = vsyncpa [#allocation6], 0 }
   0x2   :  { %11 = vsyncpa [#allocation9], 0 }
   0x3   :  { %12 = vsyncpa [#allocation4], 0  ;;  %s486_s15 = smov [#allocation5]   ;;  %s487_s17 = smov [#allocation2]  }
   0x4   :  { %s30_s16 = sshll.u32 %s486_s15, 4  ;;  %s18_s18 = sshll.u32 %s487_s17, 4  ;;  %s31_s16 = int_to_ptr.vmem [resolvable:$true] %s30_s16  ;;  %s19_s18 = int_to_ptr.vmem [resolvable:$true] %s18_s18 }
   0x5   :  { %s386_s19 = scalar_lea.vmem %s31_s16, 512  ;;  %p391_p1 = scmp.lt.s32.totalorder %s31_s16, %s31_s16 }
   0x6   :  { %p387_p0 = scmp.ne.s32.totalorder %s31_s16, %s386_s19  ;;  %p392_p2 = scmp.lt.s32.totalorder %s386_s19, %s386_s19 }
   0x8   :  { %p393_p3 = por %p392_p2, %p391_p1 }
   0xa   :  { %p394_p4 = pnand %p393_p3, %p387_p0 }
   0xc   :  { %397 = shalt.err (!%p394_p4)
}
   0xd   :  { %s488_s20 = smov 128   ;;  %s489_s21 = smov 8  }
   0xe   :  { %36 = dma.hbm_to_vmem [thread:$0]  %s567_s1, 512, %s31_s16, [#allocation6], %s488_s20, %s488_s20, %s489_s21  }
   0xf   :  { %s406_s24 = scalar_lea.vmem %s19_s18, 256  ;;  %p411_p6 = scmp.lt.s32.totalorder %s19_s18, %s19_s18 }
  0x10   :  { %p407_p5 = scmp.ne.s32.totalorder %s19_s18, %s406_s24  ;;  %p412_p7 = scmp.lt.s32.totalorder %s406_s24, %s406_s24 }
  0x12   :  { %p413_p8 = por %p412_p7, %p411_p6 }
  0x14   :  { %p414_p9 = pnand %p413_p8, %p407_p5 }
  0x16   :  { %417 = shalt.err (!%p414_p9)
}
  0x17   :  { %24 = dma.hbm_to_vmem [thread:$0]  %s566_s0, 256, %s19_s18, [#allocation3], %s488_s20, %s488_s20, %s489_s21  }
  0x18   :  { %s490_s27 = smov [#allocation7]   ;;  %s491_s29 = smov [#allocation8]  }
  0x19   :  { %s42_s28 = sshll.u32 %s490_s27, 4  ;;  %s54_s30 = sshll.u32 %s491_s29, 4  ;;  %s43_s28 = int_to_ptr.vmem [resolvable:$true] %s42_s28  ;;  %s55_s30 = int_to_ptr.vmem [resolvable:$true] %s54_s30 }
  0x1a   :  { %s426_s1 = scalar_lea.vmem %s43_s28, 512  ;;  %p431_p11 = scmp.lt.s32.totalorder %s43_s28, %s43_s28 }
  0x1b   :  { %p427_p10 = scmp.ne.s32.totalorder %s43_s28, %s426_s1  ;;  %p432_p12 = scmp.lt.s32.totalorder %s426_s1, %s426_s1 }
  0x1d   :  { %p433_p13 = por %p432_p12, %p431_p11 }
  0x1f   :  { %p434_p0 = pnand %p433_p13, %p427_p10 }
  0x21   :  { %437 = shalt.err (!%p434_p0)
}
  0x22   :  { %48 = dma.hbm_to_vmem [thread:$0]  %s568_s2, 512, %s43_s28, [#allocation6], %s488_s20, %s488_s20, %s489_s21  }
  0x23   :  { %s446_s0 = scalar_lea.vmem %s55_s30, 256  ;;  %p451_p2 = scmp.lt.s32.totalorder %s55_s30, %s55_s30 }
  0x24   :  { %p447_p1 = scmp.ne.s32.totalorder %s55_s30, %s446_s0  ;;  %p452_p3 = scmp.lt.s32.totalorder %s446_s0, %s446_s0 }
  0x26   :  { %p453_p4 = por %p452_p3, %p451_p2 }
  0x28   :  { %p454_p5 = pnand %p453_p4, %p447_p1 }
  0x2a   :  { %457 = shalt.err (!%p454_p5)
}
  0x2b   :  { %60 = dma.hbm_to_vmem [thread:$0]  %s569_s3, 256, %s55_s30, [#allocation9], %s488_s20, %s488_s20, %s489_s21  }
  0x2c   :  { %478 = dma.done.wait [#allocation3], 256  }
  0x2d   :  { %479 = vsyncadd [#allocation3], 4294967040 }
  0x2e   :  { %480 = dma.done.wait [#allocation6], 1024  }
  0x2f   :  { %481 = vsyncadd [#allocation6], 4294966272 }
  0x30   :  { %482 = dma.done.wait [#allocation9], 256  }
  0x31   :  { %483 = vsyncadd [#allocation9], 4294967040  ;;  %v492_v0 = vmov 0.0   ;;  %vm493_vm0 = vmmov 0   ;;  %v80_v1 = vld [vmem:[#allocation5] sm:$0xff]  ;;  %v81_v2 = vld [vmem:[#allocation5 + $0x8] sm:$0xff] }
  0x32   :  { %337 = vmatprep.subr.bf16.mxu0 %v492_v0  ;;  %343 = vmatprep.subr.bf16.mxu1 %v492_v0  ;;  %vm92_vm1 = vcmask 261120   ;;  %v82_v3 = vld [vmem:[#allocation5 + $0x10] sm:$0xff]  ;;  %v84_v4 = vpack.c.bf16 %v81_v2, %v80_v1  ;;  %v83_v5 = vld [vmem:[#allocation5 + $0x18] sm:$0xff]  ;;  %vm185_vm2 = vcmask 130048   ;;  %v86_v35 = vld [vmem:[#allocation7] sm:$0xff]  ;;  %s494_s2 = smov [#allocation10]  }
  0x33   :  { %339 = vmatprep.mubr.msk.bf16.mxu0 %vm493_vm0, %v492_v0  ;;  %345 = vmatprep.mubr.msk.bf16.mxu1 %vm493_vm0, %v492_v0  ;;  %v74_v6 = vld [vmem:[#allocation2] sm:$0xff]  ;;  %v75_v7 = vld [vmem:[#allocation2 + $0x8] sm:$0xff]  ;;  %v85_v8 = vpack.c.bf16 %v83_v5, %v82_v3  ;;  %v87_v36 = vld [vmem:[#allocation7 + $0x8] sm:$0xff]  ;;  %s311_s3 = sshll.u32 %s494_s2, 4  ;;  %s312_s3 = int_to_ptr.vmem [resolvable:$true] %s311_s3 }
  0x34   :  { %v97_v9 = vsel %vm92_vm1, %v84_v4, 0  ;;  %v76_v10 = vmul.f32 0.5, %v74_v6  ;;  %v77_v12 = vmul.f32 0.5, %v75_v7  ;;  %v90_v37 = vpack.c.bf16 %v87_v36, %v86_v35  ;;  %v88_v38 = vld [vmem:[#allocation7 + $0x10] sm:$0xff]  ;;  %v89_v39 = vld [vmem:[#allocation7 + $0x18] sm:$0xff]  ;;  %v208_v43 = vld [vmem:[#allocation8] sm:$0xff]  ;;  %p463_p7 = scmp.lt.s32.totalorder %s312_s3, %s312_s3 }
  0x35   :  { %338 = vmatpush3.bf16.xpose.msra.mxu0 %v97_v9  ;;  %v143_v11 = vsel %vm92_vm1, %v85_v8, 0  ;;  %v91_v40 = vpack.c.bf16 %v89_v39, %v88_v38  ;;  %vm210_vm3 = vcmp.ge.f32.partialorder %v208_v43, 0.5  ;;  %v209_v47 = vld [vmem:[#allocation8 + $0x8] sm:$0xff]  ;;  %s458_s9 = scalar_lea.vmem %s312_s3, 256 }
  0x36   :  { %344 = vmatpush3.bf16.xpose.msra.mxu1 %v143_v11  ;;  %349 = vmatprep.subr.bf16.mxu0 %v492_v0  ;;  %v78_v13 = vpack.c.bf16 %v76_v10, %v76_v10  ;;  %v79_v14 = vpack.c.bf16 %v77_v12, %v77_v12  ;;  %vm211_vm4 = vcmp.ge.f32.partialorder %v209_v47, 0.5  ;;  %p459_p6 = scmp.ne.s32.totalorder %s312_s3, %s458_s9  ;;  %p464_p8 = scmp.lt.s32.totalorder %s458_s9, %s458_s9 }
  0x37   :  { %355 = vmatprep.subr.bf16.mxu1 %v492_v0 }
  0x38   :  { %p465_p9 = por %p464_p8, %p463_p7 }
  0x3a   :  { %p466_p10 = pnand %p465_p9, %p459_p6 }
  0x3c   :  { %340 = vmatmul.mubr.msk.bf16.vlgmr.msra.gmra.mxu0 %vm92_vm1, %v78_v13 }
  0x3d   :  { %346 = vmatmul.mubr.msk.bf16.vlgmr.msra.gmra.mxu1 %vm92_vm1, %v79_v14  ;;  %351 = vmatprep.mubr.msk.bf16.mxu0 %vm493_vm0, %v492_v0 }
  0x3e   :  { %357 = vmatprep.mubr.msk.bf16.mxu1 %vm493_vm0, %v492_v0  ;;  %350 = vmatpush3.bf16.msra.mxu0 %v90_v37 }
  0x3f   :  { %356 = vmatpush3.bf16.msra.mxu1 %v91_v40 }
  0xfc   :  { %v133_v15 = vpop.f32.mrf.mxu0 }
  0xfd   :  { %v179_v16 = vpop.f32.mrf.mxu1  ;;  %v186_v17 = vsel %vm185_vm2, %v133_v15, -inf }
  0xfe   :  { %187 = vmax.xlane.f32.xlu0 %v186_v17  ;;  %v341_v18 = vpop.f32.mrf.mxu0  ;;  %v189_v20 = vsel %vm185_vm2, %v179_v16, -inf }
  0xff   :  { %v347_v19 = vpop.f32.mrf.mxu1 }
 0x100   :  { %v136_v21 = vpop.f32.mrf.mxu0 }
 0x101   :  { %v182_v22 = vpop.f32.mrf.mxu1 }
 0x102   :  { %190 = vmax.xlane.f32.xlu0 %v189_v20  ;;  %v342_v23 = vpop.f32.mrf.mxu0 }
 0x103   :  { %v348_v24 = vpop.f32.mrf.mxu1 }
 0x187   :  { %v188_v25 = vpop.xlane.xlu0 %187 }
 0x188   :  { %v192_v26 = vsub.f32 %v133_v15, %v188_v25 }
 0x18a   :  { %v194_v27 = vmul.f32 1.442695, %v192_v26 }
 0x18b   :  { %v191_v28 = vpop.xlane.xlu0 %190 }
 0x18c   :  { %370 = vpow2.f32 %v194_v27  ;;  %v193_v29 = vsub.f32 %v179_v16, %v191_v28 }
 0x18e   :  { %v196_v30 = vmul.f32 1.442695, %v193_v29 }
 0x190   :  { %372 = vpow2.f32 %v196_v30 }
 0x199   :  { %v371_v31 = vpop.eup %370 }
 0x19a   :  { %v198_v32 = vsel %vm185_vm2, %v371_v31, 0.0 }
 0x19b   :  { %199 = vadd.xlane.f32.xlu1 %v198_v32 }
 0x19d   :  { %v373_v33 = vpop.eup %372 }
 0x19e   :  { %v201_v34 = vsel %vm185_vm2, %v373_v33, 0.0 }
 0x19f   :  { %202 = vadd.xlane.f32.xlu1 %v201_v34 }
 0x224   :  { %v200_v41 = vpop.xlane.xlu1 %199 }
 0x225   :  { %374 = vrcp.f32 %v200_v41 }
 0x228   :  { %v203_v42 = vpop.xlane.xlu1 %202 }
 0x229   :  { %376 = vrcp.f32 %v203_v42 }
 0x232   :  { %v375_v44 = vpop.eup %374 }
 0x233   :  { %v206_v45 = vmul.f32 %v375_v44, %v371_v31 }
 0x235   :  { %v212_v46 = vmul.f32 2.0, %v206_v45 }
 0x236   :  { %v377_v48 = vpop.eup %376 }
 0x237   :  { %v207_v49 = vmul.f32 %v377_v48, %v373_v33  ;;  %v214_v50 = vsel %vm210_vm3, %v212_v46, 0.0 }
 0x238   :  { %v216_v51 = vpack.c.bf16 %v214_v50, %v214_v50 }
 0x239   :  { %v213_v52 = vmul.f32 2.0, %v207_v49 }
 0x23a   :  { %352 = vmatmul.mubr.msk.bf16.vlgmr.msra.gmra.mxu0 %vm185_vm2, %v216_v51 }
 0x23b   :  { %v215_v53 = vsel %vm211_vm4, %v213_v52, 0.0 }
 0x23c   :  { %v217_v54 = vpack.c.bf16 %v215_v53, %v215_v53 }
 0x23e   :  { %358 = vmatmul.mubr.msk.bf16.vlgmr.msra.gmra.mxu1 %vm185_vm2, %v217_v54 }
 0x2fa   :  { %v255_v55 = vpop.f32.mrf.mxu0 }
 0x2fb   :  { %304 = vst.msk [vmem:[#allocation10] sm:$0xff] %vm92_vm1, %v255_v55 }
 0x2fc   :  { %v353_v56 = vpop.f32.mrf.mxu0 }
 0x2fe   :  { %v258_v57 = vpop.f32.mrf.mxu0  ;;  %v298_v58 = vpop.f32.mrf.mxu1 }
 0x2ff   :  { %305 = vst.msk [vmem:[#allocation10 + $0x8] sm:$0xff] %vm92_vm1, %v298_v58 }
 0x300   :  { %v354_v59 = vpop.f32.mrf.mxu0  ;;  %v359_v60 = vpop.f32.mrf.mxu1 }
 0x301   :  { %469 = shalt.err (!%p466_p10)
}
 0x302   :  { %317 = dma.vmem_to_hbm [thread:$0]  %s312_s3, 256, %s570_s4, [#allocation4], %s488_s20, %s488_s20, %s489_s21   ;;  %v301_v61 = vpop.f32.mrf.mxu1 }
 0x304   :  { %v360_v62 = vpop.f32.mrf.mxu1 }
 0x305   :  { %484 = dma.done.wait [#allocation4], 256  }
 0x306   :  { %485 = vsyncadd [#allocation4], 4294967040 }
 0x307   :  { %321 = vsyncpa [#allocation3], 1 }
 0x308   :  { %322 = vsyncpa [#allocation6], 1 }
 0x309   :  { %323 = vsyncpa [#allocation9], 1 }
 0x30a   :  { %324 = vsyncpa [#allocation4], 1 }

</bundles_post_ra>
